<compile_context>
chip_gen: v7x
topology: tpu7x:2x2x1
jax: 0.10.0
libtpu: 0.0.40
codegen_flags: <defaults>
</compile_context>

<pallas_src>
import jax
import jax.numpy as jnp
import numpy as np
from jax.experimental import pallas as pl
from jax.experimental.pallas import tpu as pltpu


# ------------------------------- Pallas kernel --------------------------------
def regression_head_kernel(
    bidx_ref, x_ref,                     # [1, tile_n] int32, [tile_n, D_in] bf16
    w1_ref, b1_ref,                      # fc1 (+bn1 folded)   [D_in, H] bf16, [1, H] f32
    wp1_ref, bp1_ref,                    # proj1               [D_in, H] bf16, [1, H] f32
    wstack_ref, bstack_ref,              # fc2,fc3,fc4,fc5,fc6,proj2 stacked: [6,H,H] bf16, [6,1,H] f32
    w7_ref, b7_ref,                      # fc7 (+bn7 folded)   [H, H2]
    w8_ref, b8_ref,                      # fc8, zero-padded to 128 output lanes
    out_ref,                             # [B, 128] f32 (lane-dense; real result in column 0)
    psum_acc, cnt_acc,                   # VMEM scratch: [B, D_in] f32, [B, 1] f32
):
    step = pl.program_id(0)
    n_graphs = out_ref.shape[0]
    tile_n = x_ref.shape[0]

    @pl.when(step == 0)
    def _():
        psum_acc[...] = jnp.zeros_like(psum_acc)
        cnt_acc[...] = jnp.zeros_like(cnt_acc)

    # ---- global mean pool: accumulate per-graph sums & node counts over this node tile ----
    bidx = bidx_ref[...]                                                    # [1, tile_n] int32
    gids = jax.lax.broadcasted_iota(jnp.int32, (n_graphs, tile_n), 0)       # [B, tile_n]
    onehot_t = (bidx == gids).astype(jnp.bfloat16)                          # [B, tile_n] (canonical MXU lhs)
    psum_acc[...] += jnp.dot(onehot_t, x_ref[...],
                             preferred_element_type=jnp.float32)            # [B, D_in]
    cnt_acc[...] += jnp.sum(onehot_t.astype(jnp.float32), axis=-1, keepdims=True)  # XLU reduce

    # ---- residual MLP stack, only on the last node tile ----
    @pl.when(step == pl.num_programs(0) - 1)
    def _():
        inv_cnt = pl.reciprocal(jnp.maximum(cnt_acc[...], 1.0), approx=True)  # EUP
        pooled = psum_acc[...] * inv_cnt                                      # [B, D_in] f32

        def linear(h, w, b, relu=True):
            y = jnp.dot(h.astype(jnp.bfloat16), w,
                        preferred_element_type=jnp.float32) + b
            return jnp.maximum(y, 0.0) if relu else y

        identity = linear(pooled, wp1_ref[...], bp1_ref[...], relu=False)     # proj1(identity)
        h = linear(pooled, w1_ref[...], b1_ref[...])                          # relu(bn1(fc1(x)))
        h = linear(h, wstack_ref[0], bstack_ref[0]) + identity                # relu(bn2(fc2(x))) + id

        identity = h
        h = linear(h, wstack_ref[1], bstack_ref[1])                           # relu(bn3(fc3(x)))
        h = linear(h, wstack_ref[2], bstack_ref[2])                           # relu(bn4(fc4(x)))
        identity = linear(identity, wstack_ref[5], bstack_ref[5], relu=False) # proj2(identity)
        h = linear(h, wstack_ref[3], bstack_ref[3])                           # relu(bn5(fc5(x)))
        h = linear(h, wstack_ref[4], bstack_ref[4])                           # relu(bn6(fc6(x)))
        h = h + identity

        h = linear(h, w7_ref[...], b7_ref[...])                               # relu(bn7(fc7(x)))
        out_ref[...] = linear(h, w8_ref[...], b8_ref[...], relu=False)        # fc8 (128-lane padded)


# --------------------------------- wrapper ------------------------------------
def _round_up(a, b):
    return (a + b - 1) // b * b


def regression_head_forward(x, batch_index, params, n_graphs):
    """x: [N, D_in] f32 node features; batch_index: [N] int graph id per node. Returns [B, 1] f32."""
    (fc1, proj1, fc2, fc3, fc4, proj2, fc5, fc6, fc7, fc8) = params
    n_nodes, d_in = x.shape
    hidden = fc1[0].shape[1]
    h2 = fc7[0].shape[1]

    # ---- node-axis tiling / padding (padded nodes get graph id -1 -> contribute nothing) ----
    max_tile = 256
    if n_nodes <= max_tile:
        tile_n = _round_up(n_nodes, 8)
        n_pad = tile_n
    else:
        tile_n = max_tile
        n_pad = _round_up(n_nodes, tile_n)

    x_p = jnp.zeros((n_pad, d_in), jnp.bfloat16).at[:n_nodes].set(x.astype(jnp.bfloat16))
    bidx = jnp.full((1, n_pad), -1, jnp.int32).at[0, :n_nodes].set(batch_index.astype(jnp.int32))

    # ---- weights: bf16 storage, f32 biases; six [H,H] matrices stacked; fc8 padded to 128 lanes ----
    def wb(p):
        return p[0].astype(jnp.bfloat16), p[1].astype(jnp.float32)

    w1, b1 = wb(fc1)
    wp1, bp1 = wb(proj1)
    stack_src = [fc2, fc3, fc4, fc5, fc6, proj2]               # kernel index order 0..5
    w_stack = jnp.stack([p[0].astype(jnp.bfloat16) for p in stack_src])   # [6, H, H]
    b_stack = jnp.stack([p[1].astype(jnp.float32) for p in stack_src])    # [6, 1, H]
    w7, b7 = wb(fc7)
    w8 = jnp.zeros((h2, 128), jnp.bfloat16).at[:, :1].set(fc8[0].astype(jnp.bfloat16))
    b8 = jnp.zeros((1, 128), jnp.float32).at[:, :1].set(fc8[1].astype(jnp.float32))

    inputs = [bidx, x_p, w1, b1, wp1, bp1, w_stack, b_stack, w7, b7, w8, b8]

    def full_spec(shape):
        return pl.BlockSpec(shape, lambda i, _s=shape: (0,) * len(_s))

    in_specs = [
        pl.BlockSpec((1, tile_n), lambda i: (0, i)),           # bidx tile
        pl.BlockSpec((tile_n, d_in), lambda i: (i, 0)),        # x tile (double-buffered)
    ] + [full_spec(a.shape) for a in inputs[2:]]

    grid = (n_pad // tile_n,)

    # explicit VMEM budget from the chosen tile sizes (double-buffered x / bidx + resident weights)
    weight_bytes = sum(int(a.size) * a.dtype.itemsize for a in inputs[2:])
    vmem_est = (2 * (tile_n * d_in * 2 + tile_n * 4)
                + weight_bytes
                + 2 * n_graphs * 128 * 4
                + n_graphs * (d_in + 128) * 4)
    vmem_limit = int(min(max(8 * 1024 * 1024, 4 * vmem_est), 48 * 1024 * 1024))

    out = pl.pallas_call(
        regression_head_kernel,
        out_shape=jax.ShapeDtypeStruct((n_graphs, 128), jnp.float32),
        grid_spec=pltpu.PrefetchScalarGridSpec(
            num_scalar_prefetch=0,
            grid=grid,
            in_specs=in_specs,
            out_specs=pl.BlockSpec((n_graphs, 128), lambda i: (0, 0)),
            scratch_shapes=[
                pltpu.VMEM((n_graphs, d_in), jnp.float32),     # pooled-sum accumulator
                pltpu.VMEM((n_graphs, 1), jnp.float32),        # per-graph node counts
            ],
        ),
        compiler_params=pltpu.CompilerParams(
            dimension_semantics=("arbitrary",),                # node axis is a reduction
            vmem_limit_bytes=vmem_limit,
        ),
    )(*inputs)

    return out[:, :1]   # f32; exact float64 upcast is done on host by the caller


# --------------------------- deterministic parameters --------------------------
def make_params(key, input_size, hidden_size, eps=1e-5):
    """Linear weights ([in, out]) + biases ([1, out]) with eval-mode BN folded in (f32)."""
    h2 = hidden_size // 2

    def nxt():
        nonlocal key
        key, sub = jax.random.split(key)
        return sub

    def lin(din, dout, scale=0.2):
        w = scale * jax.random.normal(nxt(), (din, dout), dtype=jnp.float32)
        b = scale * jax.random.normal(nxt(), (1, dout), dtype=jnp.float32)
        return w, b

    def bn(dout):
        gamma = 1.0 + 0.1 * jax.random.normal(nxt(), (dout,), dtype=jnp.float32)
        beta = 0.1 * jax.random.normal(nxt(), (dout,), dtype=jnp.float32)
        mean = 0.1 * jax.random.normal(nxt(), (dout,), dtype=jnp.float32)
        var = jnp.abs(jax.random.normal(nxt(), (dout,), dtype=jnp.float32)) + 0.5
        return gamma, beta, mean, var

    def fold(w, b, gamma, beta, mean, var):
        scale = gamma / jnp.sqrt(var + eps)                    # eval-mode BN affine
        return w * scale[None, :], (b - mean[None, :]) * scale[None, :] + beta[None, :]

    params = []
    params.append(fold(*lin(input_size, hidden_size), *bn(hidden_size)))   # fc1+bn1
    params.append(lin(input_size, hidden_size))                            # proj1
    params.append(fold(*lin(hidden_size, hidden_size), *bn(hidden_size)))  # fc2+bn2
    params.append(fold(*lin(hidden_size, hidden_size), *bn(hidden_size)))  # fc3+bn3
    params.append(fold(*lin(hidden_size, hidden_size), *bn(hidden_size)))  # fc4+bn4
    params.append(lin(hidden_size, hidden_size))                           # proj2
    params.append(fold(*lin(hidden_size, hidden_size), *bn(hidden_size)))  # fc5+bn5
    params.append(fold(*lin(hidden_size, hidden_size), *bn(hidden_size)))  # fc6+bn6
    params.append(fold(*lin(hidden_size, h2), *bn(h2)))                    # fc7+bn7
    params.append(lin(h2, 1))                                              # fc8
    return params


# ------------------------------ pure-JAX reference ------------------------------
def reference_forward(x, batch_index, params, n_graphs):
    """Emulates the kernel's bf16 weight/activation rounding in plain f32 JAX."""
    def bf(a):
        return a.astype(jnp.bfloat16).astype(jnp.float32)

    onehot = (batch_index[:, None] == jnp.arange(n_graphs)[None, :]).astype(jnp.float32)
    pooled = (onehot.T @ bf(x)) / jnp.maximum(onehot.sum(0)[:, None], 1.0)

    def lin(h, p, relu):
        y = bf(h) @ bf(p[0]) + p[1]
        return jnp.maximum(y, 0.0) if relu else y

    (fc1, proj1, fc2, fc3, fc4, proj2, fc5, fc6, fc7, fc8) = params
    identity = pooled
    h = lin(pooled, fc1, True)
    identity = lin(identity, proj1, False)
    h = lin(h, fc2, True) + identity
    identity = h
    h = lin(h, fc3, True)
    h = lin(h, fc4, True)
    identity = lin(identity, proj2, False)
    h = lin(h, fc5, True)
    h = lin(h, fc6, True)
    h = h + identity
    h = lin(h, fc7, True)
    return lin(h, fc8, False)


if __name__ == "__main__":
    input_size, hidden_size = 32, 32
    n_nodes, n_graphs = 8, 2

    key = jax.random.PRNGKey(0)
    kx, kp = jax.random.split(key)
    x = jax.random.normal(kx, (n_nodes, input_size), dtype=jnp.float32)
    batch_index = jnp.array([0, 0, 0, 1, 1, 1, 1, 1], dtype=jnp.int32)   # graph id per node
    mass_shift = jnp.zeros((n_graphs,), jnp.float32)  # unused by the PyTorch forward

    params = make_params(kp, input_size, hidden_size)

    out_f32 = regression_head_forward(x, batch_index, params, n_graphs)
    out_f32 = jax.block_until_ready(out_f32)

    # matches `.type(torch.float64)` — exact upcast done on host (no global x64 flag needed)
    out64 = np.asarray(out_f32, dtype=np.float64)

    ref = np.asarray(reference_forward(x, batch_index, params, n_graphs), dtype=np.float64)
    assert out64.shape == (n_graphs, 1) and out64.dtype == np.float64
    assert np.allclose(out64, ref, rtol=1e-2, atol=1e-2), (out64, ref)
    print("KERNEL_OK")
</pallas_src>

<mosaic_0001>
module attributes {stable_mosaic.version = 11 : i64} {
  func.func @regression_head_kernel(%arg0: i32, %arg1: memref<1x8xi32, #tpu.memory_space<vmem>>, %arg2: memref<8x32xbf16, #tpu.memory_space<vmem>>, %arg3: memref<32x32xbf16, #tpu.memory_space<vmem>>, %arg4: memref<1x32xf32, #tpu.memory_space<vmem>>, %arg5: memref<32x32xbf16, #tpu.memory_space<vmem>>, %arg6: memref<1x32xf32, #tpu.memory_space<vmem>>, %arg7: memref<6x32x32xbf16, #tpu.memory_space<vmem>>, %arg8: memref<6x1x32xf32, #tpu.memory_space<vmem>>, %arg9: memref<32x16xbf16, #tpu.memory_space<vmem>>, %arg10: memref<1x16xf32, #tpu.memory_space<vmem>>, %arg11: memref<16x128xbf16, #tpu.memory_space<vmem>>, %arg12: memref<1x128xf32, #tpu.memory_space<vmem>>, %arg13: memref<2x128xf32, #tpu.memory_space<vmem>>, %arg14: memref<2x32xf32, #tpu.memory_space<vmem>>, %arg15: memref<2x1xf32, #tpu.memory_space<vmem>>) attributes {dimension_semantics = [#tpu.dimension_semantics<arbitrary>], iteration_bounds = array<i64: 1>, scalar_prefetch = 0 : i64, scratch_operands = 2 : i64, tpu.core_type = #tpu.core_type<tc>, window_params = [{transform_indices = @transform_0, window_bounds = array<i64: 1, 8>}, {transform_indices = @transform_1, window_bounds = array<i64: 8, 32>}, {pipeline_mode = #tpu.pipeline_mode<synchronous>, transform_indices = @transform_2, window_bounds = array<i64: 32, 32>}, {pipeline_mode = #tpu.pipeline_mode<synchronous>, transform_indices = @transform_3, window_bounds = array<i64: 1, 32>}, {pipeline_mode = #tpu.pipeline_mode<synchronous>, transform_indices = @transform_4, window_bounds = array<i64: 32, 32>}, {pipeline_mode = #tpu.pipeline_mode<synchronous>, transform_indices = @transform_5, window_bounds = array<i64: 1, 32>}, {pipeline_mode = #tpu.pipeline_mode<synchronous>, transform_indices = @transform_6, window_bounds = array<i64: 6, 32, 32>}, {pipeline_mode = #tpu.pipeline_mode<synchronous>, transform_indices = @transform_7, window_bounds = array<i64: 6, 1, 32>}, {pipeline_mode = #tpu.pipeline_mode<synchronous>, transform_indices = @transform_8, window_bounds = array<i64: 32, 16>}, {pipeline_mode = #tpu.pipeline_mode<synchronous>, transform_indices = @transform_9, window_bounds = array<i64: 1, 16>}, {pipeline_mode = #tpu.pipeline_mode<synchronous>, transform_indices = @transform_10, window_bounds = array<i64: 16, 128>}, {pipeline_mode = #tpu.pipeline_mode<synchronous>, transform_indices = @transform_11, window_bounds = array<i64: 1, 128>}, {pipeline_mode = #tpu.pipeline_mode<synchronous>, transform_indices = @transform_12, window_bounds = array<i64: 2, 128>}]} {
    %c0_i32 = arith.constant 0 : i32
    %0 = arith.cmpi eq, %arg0, %c0_i32 : i32
    %1 = arith.extui %0 : i1 to i32
    %c0_i32_0 = arith.constant 0 : i32
    %2 = arith.cmpi ne, %1, %c0_i32_0 : i32
    scf.if %2 {
      %cst_15 = arith.constant 0.000000e+00 : f32
      %24 = vector.broadcast %cst_15 : f32 to vector<2x32xf32>
      %c0_16 = arith.constant 0 : index
      %c0_17 = arith.constant 0 : index
      %25 = vector.load %arg14[%c0_16, %c0_17] : memref<2x32xf32, #tpu.memory_space<vmem>>, vector<2x32xf32>
      tpu.vector_store %arg14[%c0_16, %c0_17], %24 {strides = array<i32>} : memref<2x32xf32, #tpu.memory_space<vmem>>, vector<2x32xf32>,
      %cst_18 = arith.constant 0.000000e+00 : f32
      %26 = vector.broadcast %cst_18 : f32 to vector<2x1xf32>
      %c0_19 = arith.constant 0 : index
      %c0_20 = arith.constant 0 : index
      %27 = vector.load %arg15[%c0_19, %c0_20] : memref<2x1xf32, #tpu.memory_space<vmem>>, vector<2x1xf32>
      tpu.vector_store %arg15[%c0_19, %c0_20], %26 {strides = array<i32>} : memref<2x1xf32, #tpu.memory_space<vmem>>, vector<2x1xf32>,
    } else {
    }
    %c0 = arith.constant 0 : index
    %c0_1 = arith.constant 0 : index
    %3 = vector.load %arg1[%c0, %c0_1] : memref<1x8xi32, #tpu.memory_space<vmem>>, vector<1x8xi32>
    %4 = tpu.iota {dimensions = array<i32: 0>} : vector<2x8xi32>
    %5 = vector.broadcast %3 : vector<1x8xi32> to vector<2x8xi32>
    %6 = arith.cmpi eq, %5, %4 : vector<2x8xi32>
    %7 = arith.extui %6 : vector<2x8xi1> to vector<2x8xi32>
    %8 = arith.sitofp %7 : vector<2x8xi32> to vector<2x8xf32>
    %9 = arith.truncf %8 : vector<2x8xf32> to vector<2x8xbf16>
    %c0_2 = arith.constant 0 : index
    %c0_3 = arith.constant 0 : index
    %10 = vector.load %arg14[%c0_2, %c0_3] : memref<2x32xf32, #tpu.memory_space<vmem>>, vector<2x32xf32>
    %c0_4 = arith.constant 0 : index
    %c0_5 = arith.constant 0 : index
    %11 = vector.load %arg2[%c0_4, %c0_5] : memref<8x32xbf16, #tpu.memory_space<vmem>>, vector<8x32xbf16>
    %cst = arith.constant dense<0.000000e+00> : vector<2x32xf32>
    %12 = tpu.matmul %9, %11, %cst {dimension_numbers = #tpu.dot_dimension_numbers<[1], [0], [0], [1], [0, 0, 1, 1], [], []>} : vector<2x8xbf16>, vector<8x32xbf16>, vector<2x32xf32> -> vector<2x32xf32>
    %13 = arith.addf %10, %12 : vector<2x32xf32>
    %c0_6 = arith.constant 0 : index
    %c0_7 = arith.constant 0 : index
    %14 = vector.load %arg14[%c0_6, %c0_7] : memref<2x32xf32, #tpu.memory_space<vmem>>, vector<2x32xf32>
    tpu.vector_store %arg14[%c0_6, %c0_7], %13 {strides = array<i32>} : memref<2x32xf32, #tpu.memory_space<vmem>>, vector<2x32xf32>,
    %c0_8 = arith.constant 0 : index
    %c0_9 = arith.constant 0 : index
    %15 = vector.load %arg15[%c0_8, %c0_9] : memref<2x1xf32, #tpu.memory_space<vmem>>, vector<2x1xf32>
    %16 = arith.extf %9 : vector<2x8xbf16> to vector<2x8xf32>
    %cst_10 = arith.constant dense<0.000000e+00> : vector<2xf32>
    %17 = vector.multi_reduction <add>, %16, %cst_10 [1] : vector<2x8xf32> to vector<2xf32>
    %18 = vector.shape_cast %17 : vector<2xf32> to vector<2x1xf32>
    %19 = arith.addf %15, %18 : vector<2x1xf32>
    %c0_11 = arith.constant 0 : index
    %c0_12 = arith.constant 0 : index
    %20 = vector.load %arg15[%c0_11, %c0_12] : memref<2x1xf32, #tpu.memory_space<vmem>>, vector<2x1xf32>
    tpu.vector_store %arg15[%c0_11, %c0_12], %19 {strides = array<i32>} : memref<2x1xf32, #tpu.memory_space<vmem>>, vector<2x1xf32>,
    %c0_i32_13 = arith.constant 0 : i32
    %21 = arith.cmpi eq, %arg0, %c0_i32_13 : i32
    %22 = arith.extui %21 : i1 to i32
    %c0_i32_14 = arith.constant 0 : i32
    %23 = arith.cmpi ne, %22, %c0_i32_14 : i32
    scf.if %23 {
      %c0_15 = arith.constant 0 : index
      %c0_16 = arith.constant 0 : index
      %24 = vector.load %arg15[%c0_15, %c0_16] : memref<2x1xf32, #tpu.memory_space<vmem>>, vector<2x1xf32>
      %cst_17 = arith.constant 1.000000e+00 : f32
      %25 = vector.broadcast %cst_17 : f32 to vector<2x1xf32>
      %26 = arith.maximumf %24, %25 : vector<2x1xf32>
      %27 = tpu.reciprocal %26 {approx = true} : vector<2x1xf32> -> vector<2x1xf32>
      %c0_18 = arith.constant 0 : index
      %c0_19 = arith.constant 0 : index
      %28 = vector.load %arg14[%c0_18, %c0_19] : memref<2x32xf32, #tpu.memory_space<vmem>>, vector<2x32xf32>
      %29 = vector.broadcast %27 : vector<2x1xf32> to vector<2x32xf32>
      %30 = arith.mulf %28, %29 : vector<2x32xf32>
      %c0_20 = arith.constant 0 : index
      %c0_21 = arith.constant 0 : index
      %31 = vector.load %arg5[%c0_20, %c0_21] : memref<32x32xbf16, #tpu.memory_space<vmem>>, vector<32x32xbf16>
      %c0_22 = arith.constant 0 : index
      %c0_23 = arith.constant 0 : index
      %32 = vector.load %arg6[%c0_22, %c0_23] : memref<1x32xf32, #tpu.memory_space<vmem>>, vector<1x32xf32>
      %33 = arith.truncf %30 : vector<2x32xf32> to vector<2x32xbf16>
      %cst_24 = arith.constant dense<0.000000e+00> : vector<2x32xf32>
      %34 = tpu.matmul %33, %31, %cst_24 {dimension_numbers = #tpu.dot_dimension_numbers<[1], [0], [0], [1], [0, 0, 1, 1], [], []>} : vector<2x32xbf16>, vector<32x32xbf16>, vector<2x32xf32> -> vector<2x32xf32>
      %35 = vector.broadcast %32 : vector<1x32xf32> to vector<2x32xf32>
      %36 = arith.addf %34, %35 : vector<2x32xf32>
      %c0_25 = arith.constant 0 : index
      %c0_26 = arith.constant 0 : index
      %37 = vector.load %arg3[%c0_25, %c0_26] : memref<32x32xbf16, #tpu.memory_space<vmem>>, vector<32x32xbf16>
      %c0_27 = arith.constant 0 : index
      %c0_28 = arith.constant 0 : index
      %38 = vector.load %arg4[%c0_27, %c0_28] : memref<1x32xf32, #tpu.memory_space<vmem>>, vector<1x32xf32>
      %39 = arith.truncf %30 : vector<2x32xf32> to vector<2x32xbf16>
      %cst_29 = arith.constant dense<0.000000e+00> : vector<2x32xf32>
      %40 = tpu.matmul %39, %37, %cst_29 {dimension_numbers = #tpu.dot_dimension_numbers<[1], [0], [0], [1], [0, 0, 1, 1], [], []>} : vector<2x32xbf16>, vector<32x32xbf16>, vector<2x32xf32> -> vector<2x32xf32>
      %41 = vector.broadcast %38 : vector<1x32xf32> to vector<2x32xf32>
      %42 = arith.addf %40, %41 : vector<2x32xf32>
      %cst_30 = arith.constant 0.000000e+00 : f32
      %43 = vector.broadcast %cst_30 : f32 to vector<2x32xf32>
      %44 = arith.maximumf %42, %43 : vector<2x32xf32>
      %c0_31 = arith.constant 0 : index
      %c0_32 = arith.constant 0 : index
      %c0_33 = arith.constant 0 : index
      %45 = vector.load %arg7[%c0_31, %c0_32, %c0_33] : memref<6x32x32xbf16, #tpu.memory_space<vmem>>, vector<1x32x32xbf16>
      %46 = vector.shape_cast %45 : vector<1x32x32xbf16> to vector<32x32xbf16>
      %c0_34 = arith.constant 0 : index
      %c0_35 = arith.constant 0 : index
      %c0_36 = arith.constant 0 : index
      %47 = vector.load %arg8[%c0_34, %c0_35, %c0_36] : memref<6x1x32xf32, #tpu.memory_space<vmem>>, vector<1x1x32xf32>
      %48 = vector.shape_cast %47 : vector<1x1x32xf32> to vector<1x32xf32>
      %49 = arith.truncf %44 : vector<2x32xf32> to vector<2x32xbf16>
      %cst_37 = arith.constant dense<0.000000e+00> : vector<2x32xf32>
      %50 = tpu.matmul %49, %46, %cst_37 {dimension_numbers = #tpu.dot_dimension_numbers<[1], [0], [0], [1], [0, 0, 1, 1], [], []>} : vector<2x32xbf16>, vector<32x32xbf16>, vector<2x32xf32> -> vector<2x32xf32>
      %51 = vector.broadcast %48 : vector<1x32xf32> to vector<2x32xf32>
      %52 = arith.addf %50, %51 : vector<2x32xf32>
      %cst_38 = arith.constant 0.000000e+00 : f32
      %53 = vector.broadcast %cst_38 : f32 to vector<2x32xf32>
      %54 = arith.maximumf %52, %53 : vector<2x32xf32>
      %55 = arith.addf %54, %36 : vector<2x32xf32>
      %c1 = arith.constant 1 : index
      %c0_39 = arith.constant 0 : index
      %c0_40 = arith.constant 0 : index
      %56 = vector.load %arg7[%c1, %c0_39, %c0_40] : memref<6x32x32xbf16, #tpu.memory_space<vmem>>, vector<1x32x32xbf16>
      %57 = vector.shape_cast %56 : vector<1x32x32xbf16> to vector<32x32xbf16>
      %c1_41 = arith.constant 1 : index
      %c0_42 = arith.constant 0 : index
      %c0_43 = arith.constant 0 : index
      %58 = vector.load %arg8[%c1_41, %c0_42, %c0_43] : memref<6x1x32xf32, #tpu.memory_space<vmem>>, vector<1x1x32xf32>
      %59 = vector.shape_cast %58 : vector<1x1x32xf32> to vector<1x32xf32>
      %60 = arith.truncf %55 : vector<2x32xf32> to vector<2x32xbf16>
      %cst_44 = arith.constant dense<0.000000e+00> : vector<2x32xf32>
      %61 = tpu.matmul %60, %57, %cst_44 {dimension_numbers = #tpu.dot_dimension_numbers<[1], [0], [0], [1], [0, 0, 1, 1], [], []>} : vector<2x32xbf16>, vector<32x32xbf16>, vector<2x32xf32> -> vector<2x32xf32>
      %62 = vector.broadcast %59 : vector<1x32xf32> to vector<2x32xf32>
      %63 = arith.addf %61, %62 : vector<2x32xf32>
      %cst_45 = arith.constant 0.000000e+00 : f32
      %64 = vector.broadcast %cst_45 : f32 to vector<2x32xf32>
      %65 = arith.maximumf %63, %64 : vector<2x32xf32>
      %c2 = arith.constant 2 : index
      %c0_46 = arith.constant 0 : index
      %c0_47 = arith.constant 0 : index
      %66 = vector.load %arg7[%c2, %c0_46, %c0_47] : memref<6x32x32xbf16, #tpu.memory_space<vmem>>, vector<1x32x32xbf16>
      %67 = vector.shape_cast %66 : vector<1x32x32xbf16> to vector<32x32xbf16>
      %c2_48 = arith.constant 2 : index
      %c0_49 = arith.constant 0 : index
      %c0_50 = arith.constant 0 : index
      %68 = vector.load %arg8[%c2_48, %c0_49, %c0_50] : memref<6x1x32xf32, #tpu.memory_space<vmem>>, vector<1x1x32xf32>
      %69 = vector.shape_cast %68 : vector<1x1x32xf32> to vector<1x32xf32>
      %70 = arith.truncf %65 : vector<2x32xf32> to vector<2x32xbf16>
      %cst_51 = arith.constant dense<0.000000e+00> : vector<2x32xf32>
      %71 = tpu.matmul %70, %67, %cst_51 {dimension_numbers = #tpu.dot_dimension_numbers<[1], [0], [0], [1], [0, 0, 1, 1], [], []>} : vector<2x32xbf16>, vector<32x32xbf16>, vector<2x32xf32> -> vector<2x32xf32>
      %72 = vector.broadcast %69 : vector<1x32xf32> to vector<2x32xf32>
      %73 = arith.addf %71, %72 : vector<2x32xf32>
      %cst_52 = arith.constant 0.000000e+00 : f32
      %74 = vector.broadcast %cst_52 : f32 to vector<2x32xf32>
      %75 = arith.maximumf %73, %74 : vector<2x32xf32>
      %c5 = arith.constant 5 : index
      %c0_53 = arith.constant 0 : index
      %c0_54 = arith.constant 0 : index
      %76 = vector.load %arg7[%c5, %c0_53, %c0_54] : memref<6x32x32xbf16, #tpu.memory_space<vmem>>, vector<1x32x32xbf16>
      %77 = vector.shape_cast %76 : vector<1x32x32xbf16> to vector<32x32xbf16>
      %c5_55 = arith.constant 5 : index
      %c0_56 = arith.constant 0 : index
      %c0_57 = arith.constant 0 : index
      %78 = vector.load %arg8[%c5_55, %c0_56, %c0_57] : memref<6x1x32xf32, #tpu.memory_space<vmem>>, vector<1x1x32xf32>
      %79 = vector.shape_cast %78 : vector<1x1x32xf32> to vector<1x32xf32>
      %80 = arith.truncf %55 : vector<2x32xf32> to vector<2x32xbf16>
      %cst_58 = arith.constant dense<0.000000e+00> : vector<2x32xf32>
      %81 = tpu.matmul %80, %77, %cst_58 {dimension_numbers = #tpu.dot_dimension_numbers<[1], [0], [0], [1], [0, 0, 1, 1], [], []>} : vector<2x32xbf16>, vector<32x32xbf16>, vector<2x32xf32> -> vector<2x32xf32>
      %82 = vector.broadcast %79 : vector<1x32xf32> to vector<2x32xf32>
      %83 = arith.addf %81, %82 : vector<2x32xf32>
      %c3 = arith.constant 3 : index
      %c0_59 = arith.constant 0 : index
      %c0_60 = arith.constant 0 : index
      %84 = vector.load %arg7[%c3, %c0_59, %c0_60] : memref<6x32x32xbf16, #tpu.memory_space<vmem>>, vector<1x32x32xbf16>
      %85 = vector.shape_cast %84 : vector<1x32x32xbf16> to vector<32x32xbf16>
      %c3_61 = arith.constant 3 : index
      %c0_62 = arith.constant 0 : index
      %c0_63 = arith.constant 0 : index
      %86 = vector.load %arg8[%c3_61, %c0_62, %c0_63] : memref<6x1x32xf32, #tpu.memory_space<vmem>>, vector<1x1x32xf32>
      %87 = vector.shape_cast %86 : vector<1x1x32xf32> to vector<1x32xf32>
      %88 = arith.truncf %75 : vector<2x32xf32> to vector<2x32xbf16>
      %cst_64 = arith.constant dense<0.000000e+00> : vector<2x32xf32>
      %89 = tpu.matmul %88, %85, %cst_64 {dimension_numbers = #tpu.dot_dimension_numbers<[1], [0], [0], [1], [0, 0, 1, 1], [], []>} : vector<2x32xbf16>, vector<32x32xbf16>, vector<2x32xf32> -> vector<2x32xf32>
      %90 = vector.broadcast %87 : vector<1x32xf32> to vector<2x32xf32>
      %91 = arith.addf %89, %90 : vector<2x32xf32>
      %cst_65 = arith.constant 0.000000e+00 : f32
      %92 = vector.broadcast %cst_65 : f32 to vector<2x32xf32>
      %93 = arith.maximumf %91, %92 : vector<2x32xf32>
      %c4 = arith.constant 4 : index
      %c0_66 = arith.constant 0 : index
      %c0_67 = arith.constant 0 : index
      %94 = vector.load %arg7[%c4, %c0_66, %c0_67] : memref<6x32x32xbf16, #tpu.memory_space<vmem>>, vector<1x32x32xbf16>
      %95 = vector.shape_cast %94 : vector<1x32x32xbf16> to vector<32x32xbf16>
      %c4_68 = arith.constant 4 : index
      %c0_69 = arith.constant 0 : index
      %c0_70 = arith.constant 0 : index
      %96 = vector.load %arg8[%c4_68, %c0_69, %c0_70] : memref<6x1x32xf32, #tpu.memory_space<vmem>>, vector<1x1x32xf32>
      %97 = vector.shape_cast %96 : vector<1x1x32xf32> to vector<1x32xf32>
      %98 = arith.truncf %93 : vector<2x32xf32> to vector<2x32xbf16>
      %cst_71 = arith.constant dense<0.000000e+00> : vector<2x32xf32>
      %99 = tpu.matmul %98, %95, %cst_71 {dimension_numbers = #tpu.dot_dimension_numbers<[1], [0], [0], [1], [0, 0, 1, 1], [], []>} : vector<2x32xbf16>, vector<32x32xbf16>, vector<2x32xf32> -> vector<2x32xf32>
      %100 = vector.broadcast %97 : vector<1x32xf32> to vector<2x32xf32>
      %101 = arith.addf %99, %100 : vector<2x32xf32>
      %cst_72 = arith.constant 0.000000e+00 : f32
      %102 = vector.broadcast %cst_72 : f32 to vector<2x32xf32>
      %103 = arith.maximumf %101, %102 : vector<2x32xf32>
      %104 = arith.addf %103, %83 : vector<2x32xf32>
      %c0_73 = arith.constant 0 : index
      %c0_74 = arith.constant 0 : index
      %105 = vector.load %arg9[%c0_73, %c0_74] : memref<32x16xbf16, #tpu.memory_space<vmem>>, vector<32x16xbf16>
      %c0_75 = arith.constant 0 : index
      %c0_76 = arith.constant 0 : index
      %106 = vector.load %arg10[%c0_75, %c0_76] : memref<1x16xf32, #tpu.memory_space<vmem>>, vector<1x16xf32>
      %107 = arith.truncf %104 : vector<2x32xf32> to vector<2x32xbf16>
      %cst_77 = arith.constant dense<0.000000e+00> : vector<2x16xf32>
      %108 = tpu.matmul %107, %105, %cst_77 {dimension_numbers = #tpu.dot_dimension_numbers<[1], [0], [0], [1], [0, 0, 1, 1], [], []>} : vector<2x32xbf16>, vector<32x16xbf16>, vector<2x16xf32> -> vector<2x16xf32>
      %109 = vector.broadcast %106 : vector<1x16xf32> to vector<2x16xf32>
      %110 = arith.addf %108, %109 : vector<2x16xf32>
      %cst_78 = arith.constant 0.000000e+00 : f32
      %111 = vector.broadcast %cst_78 : f32 to vector<2x16xf32>
      %112 = arith.maximumf %110, %111 : vector<2x16xf32>
      %c0_79 = arith.constant 0 : index
      %c0_80 = arith.constant 0 : index
      %113 = vector.load %arg11[%c0_79, %c0_80] : memref<16x128xbf16, #tpu.memory_space<vmem>>, vector<16x128xbf16>
      %c0_81 = arith.constant 0 : index
      %c0_82 = arith.constant 0 : index
      %114 = vector.load %arg12[%c0_81, %c0_82] : memref<1x128xf32, #tpu.memory_space<vmem>>, vector<1x128xf32>
      %115 = arith.truncf %112 : vector<2x16xf32> to vector<2x16xbf16>
      %cst_83 = arith.constant dense<0.000000e+00> : vector<2x128xf32>
      %116 = tpu.matmul %115, %113, %cst_83 {dimension_numbers = #tpu.dot_dimension_numbers<[1], [0], [0], [1], [0, 0, 1, 1], [], []>} : vector<2x16xbf16>, vector<16x128xbf16>, vector<2x128xf32> -> vector<2x128xf32>
      %117 = vector.broadcast %114 : vector<1x128xf32> to vector<2x128xf32>
      %118 = arith.addf %116, %117 : vector<2x128xf32>
      %c0_84 = arith.constant 0 : index
      %c0_85 = arith.constant 0 : index
      %119 = vector.load %arg13[%c0_84, %c0_85] : memref<2x128xf32, #tpu.memory_space<vmem>>, vector<2x128xf32>
      tpu.vector_store %arg13[%c0_84, %c0_85], %118 {strides = array<i32>} : memref<2x128xf32, #tpu.memory_space<vmem>>, vector<2x128xf32>,
    } else {
    }
    return
  }
  func.func @transform_0(%arg0: i32) -> (i32, i32) {
    %c0_i32 = arith.constant 0 : i32
    %c0_i32_0 = arith.constant 0 : i32
    return %c0_i32, %arg0 : i32, i32
  }
  func.func @transform_1(%arg0: i32) -> (i32, i32) {
    %c0_i32 = arith.constant 0 : i32
    %c0_i32_0 = arith.constant 0 : i32
    return %arg0, %c0_i32 : i32, i32
  }
  func.func @transform_2(%arg0: i32) -> (i32, i32) {
    %c0_i32 = arith.constant 0 : i32
    %c0_i32_0 = arith.constant 0 : i32
    %c0_i32_1 = arith.constant 0 : i32
    return %c0_i32, %c0_i32_0 : i32, i32
  }
  func.func @transform_3(%arg0: i32) -> (i32, i32) {
    %c0_i32 = arith.constant 0 : i32
    %c0_i32_0 = arith.constant 0 : i32
    %c0_i32_1 = arith.constant 0 : i32
    return %c0_i32, %c0_i32_0 : i32, i32
  }
  func.func @transform_4(%arg0: i32) -> (i32, i32) {
    %c0_i32 = arith.constant 0 : i32
    %c0_i32_0 = arith.constant 0 : i32
    %c0_i32_1 = arith.constant 0 : i32
    return %c0_i32, %c0_i32_0 : i32, i32
  }
  func.func @transform_5(%arg0: i32) -> (i32, i32) {
    %c0_i32 = arith.constant 0 : i32
    %c0_i32_0 = arith.constant 0 : i32
    %c0_i32_1 = arith.constant 0 : i32
    return %c0_i32, %c0_i32_0 : i32, i32
  }
  func.func @transform_6(%arg0: i32) -> (i32, i32, i32) {
    %c0_i32 = arith.constant 0 : i32
    %c0_i32_0 = arith.constant 0 : i32
    %c0_i32_1 = arith.constant 0 : i32
    %c0_i32_2 = arith.constant 0 : i32
    return %c0_i32, %c0_i32_0, %c0_i32_1 : i32, i32, i32
  }
  func.func @transform_7(%arg0: i32) -> (i32, i32, i32) {
    %c0_i32 = arith.constant 0 : i32
    %c0_i32_0 = arith.constant 0 : i32
    %c0_i32_1 = arith.constant 0 : i32
    %c0_i32_2 = arith.constant 0 : i32
    return %c0_i32, %c0_i32_0, %c0_i32_1 : i32, i32, i32
  }
  func.func @transform_8(%arg0: i32) -> (i32, i32) {
    %c0_i32 = arith.constant 0 : i32
    %c0_i32_0 = arith.constant 0 : i32
    %c0_i32_1 = arith.constant 0 : i32
    return %c0_i32, %c0_i32_0 : i32, i32
  }
  func.func @transform_9(%arg0: i32) -> (i32, i32) {
    %c0_i32 = arith.constant 0 : i32
    %c0_i32_0 = arith.constant 0 : i32
    %c0_i32_1 = arith.constant 0 : i32
    return %c0_i32, %c0_i32_0 : i32, i32
  }
  func.func @transform_10(%arg0: i32) -> (i32, i32) {
    %c0_i32 = arith.constant 0 : i32
    %c0_i32_0 = arith.constant 0 : i32
    %c0_i32_1 = arith.constant 0 : i32
    return %c0_i32, %c0_i32_0 : i32, i32
  }
  func.func @transform_11(%arg0: i32) -> (i32, i32) {
    %c0_i32 = arith.constant 0 : i32
    %c0_i32_0 = arith.constant 0 : i32
    %c0_i32_1 = arith.constant 0 : i32
    return %c0_i32, %c0_i32_0 : i32, i32
  }
  func.func @transform_12(%arg0: i32) -> (i32, i32) {
    %c0_i32 = arith.constant 0 : i32
    %c0_i32_0 = arith.constant 0 : i32
    %c0_i32_1 = arith.constant 0 : i32
    return %c0_i32, %c0_i32_0 : i32, i32
  }
}

</mosaic_0001>

<bundles_post_ra>
// kernel: tpu_custom_call.1
= control target key start
LH: loop header
LB: loop body
LE: loop exit
PB: predicated region body
PF: predicated region fallthrough
CT: control target
= control target key end

     0   :  { %17 = vsyncpa [#allocation5], 0  ;;  %s1418_s0 = inlined_call_operand.vmem [shape: s32[1,8], index: 0, kind: input, shape index: {}]   ;;  %s1419_s1 = inlined_call_operand.hbm [shape: bf16[8,32], index: 1, kind: input, shape index: {}]   ;;  %s1420_s2 = inlined_call_operand.vmem [shape: bf16[32,32], index: 2, kind: input, shape index: {}]   ;;  %s1421_s3 = inlined_call_operand.vmem [shape: f32[1,32], index: 3, kind: input, shape index: {}]   ;;  %s1422_s4 = inlined_call_operand.vmem [shape: bf16[32,32], index: 4, kind: input, shape index: {}]   ;;  %s1423_s5 = inlined_call_operand.hbm [shape: f32[1,32], index: 5, kind: input, shape index: {}]   ;;  %s1424_s6 = inlined_call_operand.hbm [shape: bf16[6,32,32], index: 6, kind: input, shape index: {}]   ;;  %s1425_s7 = inlined_call_operand.hbm [shape: f32[6,1,32], index: 7, kind: input, shape index: {}]   ;;  %s1426_s8 = inlined_call_operand.vmem [shape: bf16[32,16], index: 8, kind: input, shape index: {}]   ;;  %s1427_s9 = inlined_call_operand.vmem [shape: f32[1,16], index: 9, kind: input, shape index: {}]   ;;  %s1428_s10 = inlined_call_operand.vmem [shape: bf16[16,128], index: 10, kind: input, shape index: {}]   ;;  %s1429_s11 = inlined_call_operand.vmem [shape: f32[1,128], index: 11, kind: input, shape index: {}]   ;;  %s1430_s12 = inlined_call_operand.hbm [shape: f32[2,128], index: 12, kind: output, shape index: {}]  }
   0x1   :  { %18 = vsyncpa [#allocation8], 0 }
   0x2   :  { %19 = vsyncpa [#allocation11], 0 }
   0x3   :  { %20 = vsyncpa [#allocation6], 0  ;;  %s1190_s21 = smov [#allocation7]   ;;  %s1191_s23 = smov [#allocation4]  }
   0x4   :  { %s45_s22 = sshll.u32 %s1190_s21, 4  ;;  %s29_s24 = sshll.u32 %s1191_s23, 4  ;;  %s46_s22 = int_to_ptr.vmem [resolvable:$true] %s45_s22  ;;  %s30_s24 = int_to_ptr.vmem [resolvable:$true] %s29_s24 }
   0x5   :  { %s1072_s27 = scalar_lea.hbm %s1423_s5, 16 }
   0x6   :  { %p1073_p0 = scmp.ne.s32.totalorder %s1423_s5, %s1072_s27  ;;  %p1076_p1 = scmp.lt.u32.totalorder %s1072_s27, %s1423_s5 }
   0x8   :  { %p1078_p2 = pnand %p1076_p1, %p1073_p0 }
   0xa   :  { %1081 = shalt.err (!%p1078_p2)
}
   0xb   :  { %s1082_s14 = scalar_lea.vmem %s46_s22, 16  ;;  %s1086_s15 = scalar_lea.vmem %s46_s22, 32 }
   0xc   :  { %p1083_p3 = scmp.ne.s32.totalorder %s46_s22, %s1082_s14  ;;  %p1087_p4 = scmp.lt.s32.totalorder %s46_s22, %s46_s22 }
   0xd   :  { %p1088_p5 = scmp.lt.s32.totalorder %s1086_s15, %s1082_s14 }
   0xf   :  { %p1089_p6 = por %p1088_p5, %p1087_p4 }
  0x11   :  { %p1090_p7 = pnand %p1089_p6, %p1083_p3 }
  0x13   :  { %1093 = shalt.err (!%p1090_p7)
}
  0x14   :  { %48 = dma.hbm_to_vmem [thread:$0]  %s1423_s5, 16, %s46_s22, [#allocation8]  }
  0x15   :  { %s1094_s20 = scalar_lea.hbm %s1419_s1, 64 }
  0x16   :  { %p1095_p8 = scmp.ne.s32.totalorder %s1419_s1, %s1094_s20  ;;  %p1098_p9 = scmp.lt.u32.totalorder %s1094_s20, %s1419_s1 }
  0x18   :  { %p1100_p10 = pnand %p1098_p9, %p1095_p8 }
  0x1a   :  { %1103 = shalt.err (!%p1100_p10)
}
  0x1b   :  { %s1104_s27 = scalar_lea.vmem %s30_s24, 64  ;;  %p1109_p12 = scmp.lt.s32.totalorder %s30_s24, %s30_s24 }
  0x1c   :  { %p1105_p11 = scmp.ne.s32.totalorder %s30_s24, %s1104_s27  ;;  %p1110_p13 = scmp.lt.s32.totalorder %s1104_s27, %s1104_s27 }
  0x1e   :  { %p1111_p0 = por %p1110_p13, %p1109_p12 }
  0x20   :  { %p1112_p1 = pnand %p1111_p0, %p1105_p11 }
  0x22   :  { %1115 = shalt.err (!%p1112_p1)
}
  0x23   :  { %32 = dma.hbm_to_vmem [thread:$0]  %s1419_s1, 64, %s30_s24, [#allocation5]  }
  0x24   :  { %s1192_s28 = smov [#allocation9]   ;;  %s1116_s14 = scalar_lea.hbm %s1424_s6, 1536 }
  0x25   :  { %s54_s29 = sshll.u32 %s1192_s28, 4  ;;  %p1117_p2 = scmp.ne.s32.totalorder %s1424_s6, %s1116_s14  ;;  %s55_s29 = int_to_ptr.vmem [resolvable:$true] %s54_s29 }
  0x26   :  { %p1120_p3 = scmp.lt.u32.totalorder %s1116_s14, %s1424_s6 }
  0x28   :  { %p1122_p4 = pnand %p1120_p3, %p1117_p2 }
  0x2a   :  { %1125 = shalt.err (!%p1122_p4)
}
  0x2b   :  { %s1126_s19 = scalar_lea.vmem %s55_s29, 1536  ;;  %p1131_p6 = scmp.lt.s32.totalorder %s55_s29, %s55_s29 }
  0x2c   :  { %p1127_p5 = scmp.ne.s32.totalorder %s55_s29, %s1126_s19  ;;  %p1132_p7 = scmp.lt.s32.totalorder %s1126_s19, %s1126_s19 }
  0x2e   :  { %p1133_p8 = por %p1132_p7, %p1131_p6 }
  0x30   :  { %p1134_p9 = pnand %p1133_p8, %p1127_p5 }
  0x32   :  { %1137 = shalt.err (!%p1134_p9)
}
  0x33   :  { %s1193_s1 = smov 64   ;;  %s1194_s24 = smov 4  }
  0x34   :  { %60 = dma.hbm_to_vmem [thread:$0]  %s1424_s6, 1536, %s55_s29, [#allocation8], %s1193_s1, %s1193_s1, %s1194_s24  }
  0x35   :  { %s1195_s23 = smov [#allocation10]   ;;  %s1138_s5 = scalar_lea.hbm %s1425_s7, 96 }
  0x36   :  { %s66_s25 = sshll.u32 %s1195_s23, 4  ;;  %p1139_p10 = scmp.ne.s32.totalorder %s1425_s7, %s1138_s5  ;;  %s67_s25 = int_to_ptr.vmem [resolvable:$true] %s66_s25 }
  0x37   :  { %p1142_p11 = scmp.lt.u32.totalorder %s1138_s5, %s1425_s7 }
  0x39   :  { %p1144_p12 = pnand %p1142_p11, %p1139_p10 }
  0x3b   :  { %1147 = shalt.err (!%p1144_p12)
}
  0x3c   :  { %s1148_s14 = scalar_lea.vmem %s67_s25, 96  ;;  %p1153_p0 = scmp.lt.s32.totalorder %s67_s25, %s67_s25 }
  0x3d   :  { %p1149_p13 = scmp.ne.s32.totalorder %s67_s25, %s1148_s14  ;;  %p1154_p1 = scmp.lt.s32.totalorder %s1148_s14, %s1148_s14 }
  0x3f   :  { %p1155_p2 = por %p1154_p1, %p1153_p0 }
  0x41   :  { %p1156_p3 = pnand %p1155_p2, %p1149_p13 }
  0x43   :  { %1159 = shalt.err (!%p1156_p3)
}
  0x44   :  { %s1196_s6 = smov 16   ;;  %s1197_s29 = smov 1  }
  0x45   :  { %72 = dma.hbm_to_vmem [thread:$0]  %s1425_s7, 96, %s67_s25, [#allocation11], %s1196_s6, %s1196_s6, %s1197_s29  }
  0x46   :  { %1182 = dma.done.wait [#allocation5], 64  }
  0x47   :  { %1183 = vsyncadd [#allocation5], 4294967232 }
  0x48   :  { %1184 = dma.done.wait [#allocation8], 1552  }
  0x49   :  { %1185 = vsyncadd [#allocation8], 4294965744 }
  0x4a   :  { %1186 = dma.done.wait [#allocation11], 96  }
  0x4b   :  { %1187 = vsyncadd [#allocation11], 4294967200  ;;  %v103_v0 = vlaneseq  ;;  %v1198_v1 = vmov 0.0   ;;  %vm100_vm0 = vcmask 1024   ;;  %vm1199_vm1 = vmmov 0   ;;  %v1051_v10 = vld [vmem:[%s1420_s2] sm:$0xff]  }
  0x4c   :  { %954 = vmatprep.subr.bf16.mxu0 %v1198_v1  ;;  %960 = vmatprep.subr.bf16.mxu1 %v1198_v1  ;;  %101 = vst.msk [vmem:[#allocation3] sm:$0x3] %vm100_vm0, %v1198_v1  ;;  %vm119_vm2 = vcmask 1043456   ;;  %vm168_vm3 = vcmask 58368   ;;  %v881_v3 = vld [vmem:[%s1418_s0] ss:$0 sm:$0xff] }
  0x4d   :  { %956 = vmatprep.mubr.msk.bf16.mxu0 %vm1199_vm1, %v1198_v1  ;;  %964 = vmatprep.mubr.msk.bf16.mxu1 %vm1199_vm1, %v1198_v1  ;;  %v104_v2 = vshrl.u32 %v103_v0, 7  ;;  %v114_v4 = vld [vmem:[#allocation4] sm:$0xf]  ;;  %vm115_vm5 = vcmask 64512   ;;  %v1200_v9 = vmov 0   ;;  %vm98_vm6 = vcmask 254976  }
  0x4e   :  { %v121_v5 = vsel %vm119_vm2, %v114_v4, 0  ;;  %1050 = vset.pattern.permute.xlu0 %v1200_v9  ;;  %99 = vst.msk [vmem:[#allocation2] sm:$0x3] %vm98_vm6, %v1198_v1  ;;  %v1052_v11 = vld [vmem:[%s1422_s4] sm:$0xff]   ;;  %v1053_v18 = vld [vmem:[%s1420_s2 + $0x8] sm:$0xff]   ;;  %vm212_vm7 = vcmask 261120  }
  0x4f   :  { %vm109_vm4 = vcmp.eq.s32.totalorder %v881_v3, %v104_v2  ;;  %955 = vmatpush3.bf16.msra.mxu0 %v121_v5  ;;  %961 = vmatpush3.bf16.msra.mxu1 %v1052_v11  ;;  %v1054_v19 = vld [vmem:[%s1422_s4 + $0x8] sm:$0xff]   ;;  %v1056_v31 = vld [vmem:[#allocation9 + $0x8] sm:$0xff]   ;;  %v888_v32 = vld [vmem:[%s1421_s3] ss:$0 sm:$0xff]  ;;  %vm819_vm8 = vcmask 130048   ;;  %s1201_s13 = smov [#allocation12]  }
  0x50   :  { %v882_v6 = vsel %vm109_vm4, 1.0, %v1198_v1  ;;  %968 = vmatprep.subr.bf16.mxu0 %v1198_v1  ;;  %962 = vmatprep.subr.bf16.mxu1 %v1198_v1  ;;  %v1055_v29 = vld [vmem:[#allocation9] sm:$0xff]   ;;  %v1057_v44 = vld [vmem:[#allocation9 + $0x10] sm:$0xff]   ;;  %v1058_v45 = vld [vmem:[#allocation9 + $0x18] sm:$0xff]   ;;  %s870_s14 = sshll.u32 %s1201_s13, 4  ;;  %s871_s14 = int_to_ptr.vmem [resolvable:$true] %s870_s14 }
  0x51   :  { %v169_v7 = vsel %vm168_vm3, %v882_v6, 0.0  ;;  %v112_v8 = vpack.c.bf16 %v882_v6, %v882_v6  ;;  %v1061_v46 = vld [vmem:[#allocation9 + $0x20] sm:$0xff]   ;;  %v884_v48 = vld [vmem:[#allocation7] ss:$0 sm:$0xff]  ;;  %v1059_v57 = vld [vmem:[#allocation9 + $0x50] sm:$0xff]   ;;  %p1165_p5 = scmp.lt.s32.totalorder %s871_s14, %s871_s14 }
  0x52   :  { %170 = vadd.xlane.f32.xlu0 %v169_v7  ;;  %v892_v47 = vld [vmem:[#allocation10] ss:$0 sm:$0xff]  ;;  %v1060_v59 = vld [vmem:[#allocation9 + $0x58] sm:$0xff]   ;;  %v1062_v60 = vld [vmem:[#allocation9 + $0x28] sm:$0xff]  }
  0x53   :  { %957 = vmatmul.mubr.msk.bf16.vlgmr.msra.gmra.mrb[0].mxu0 %vm115_vm5, %v112_v8  ;;  %v166_v12 = vld [vmem:[#allocation3] sm:$0x3]  ;;  %963 = vmatpush3.bf16.msra.mxu1 %v1054_v19  ;;  %v896_v61 = vld [vmem:[#allocation10 + $0x1] ss:$0 sm:$0xff]  ;;  %v1063_v5 = vld [vmem:[#allocation9 + $0x30] sm:$0xff]  }
  0x54   :  { %972 = vmatprep.mubr.msk.bf16.mxu0 %vm1199_vm1, %v1198_v1  ;;  %969 = vmatpush3.bf16.msra.mxu0 %v1051_v10  ;;  %v1064_v11 = vld [vmem:[#allocation9 + $0x38] sm:$0xff]  }
  0x55   :  { %970 = vmatprep.subr.bf16.mxu0 %v1198_v1  ;;  %976 = vmatprep.subr.bf16.mxu1 %v1198_v1  ;;  %v113_v20 = vld [vmem:[#allocation2] sm:$0x3] }
  0x58   :  { %971 = vmatpush3.bf16.msra.mxu0 %v1053_v18 }
  0x59   :  { %984 = vmatprep.subr.bf16.mxu0 %v1198_v1 }
  0xdf   :  { %v171_v13 = vpop.xlane.xlu0 %170 }
  0xe0   :  { %v172_v14 = vadd.f32 %v171_v13, %v166_v12  ;;  %v1065_v12 = vld [vmem:[#allocation9 + $0x40] sm:$0xff]  }
  0xe1   :  { %v900_v13 = vld [vmem:[#allocation10 + $0x2] ss:$0 sm:$0xff] }
  0xe2   :  { %174 = vst.msk [vmem:[#allocation3] sm:$0x3] %vm100_vm0, %v172_v14 }
  0xe9   :  { %v178_v15 = vld [vmem:[#allocation3] sm:$0x3] }
  0xea   :  { %v179_v16 = vmax.f32 %v178_v15, 1.0 }
  0xec   :  { %1070 = vrcp.f32 %v179_v16 }
  0xf6   :  { %v1071_v17 = vpop.eup %1070 }
  0xf7   :  { %184 = vperm.xlu0 %1050, %v1071_v17  }
 0x126   :  { %v157_v21 = vpop.f32.mrb[0].mxu0 }
 0x127   :  { %v163_v22 = vadd.f32 %v157_v21, %v113_v20  ;;  %v958_v23 = vpop.f32.mrb[1].mxu0  ;;  %v1066_v21 = vld [vmem:[#allocation9 + $0x48] sm:$0xff]  }
 0x128   :  { %v160_v24 = vpop.f32.mrb[2].mxu0 }
 0x129   :  { %165 = vst.msk [vmem:[#allocation2] sm:$0x3] %vm98_vm6, %v163_v22  ;;  %v959_v25 = vpop.f32.mrb[3].mxu0  ;;  %v908_v22 = vld [vmem:[#allocation10 + $0x3] ss:$0 sm:$0xff] }
 0x130   :  { %v181_v26 = vld [vmem:[#allocation2] sm:$0x3] }
 0x176   :  { %v185_v27 = vpop.permute.xlu0 %184 }
 0x177   :  { %v187_v28 = vmul.f32 %v185_v27, %v181_v26 }
 0x179   :  { %v193_v30 = vpack.c.bf16 %v187_v28, %v187_v28 }
 0x17b   :  { %965 = vmatmul.mubr.msk.bf16.vlgmr.msra.gmra.mrb[0].mxu1 %vm212_vm7, %v193_v30  ;;  %973 = vmatmul.mubr.msk.bf16.vlgmr.msra.gmra.mrb[4].mxu0 %vm212_vm7, %v193_v30  ;;  %v1067_v30 = vld [vmem:[%s1426_s8] sm:$0xff]  }
 0x17c   :  { %977 = vmatpush3.bf16.msra.mxu1 %v1055_v29  ;;  %980 = vmatprep.mubr.msk.bf16.mxu1 %vm1199_vm1, %v1198_v1 }
 0x17d   :  { %978 = vmatprep.subr.bf16.mxu1 %v1198_v1  ;;  %988 = vmatprep.mubr.msk.bf16.mxu0 %vm1199_vm1, %v1198_v1 }
 0x17e   :  { %985 = vmatpush3.bf16.msra.mxu0 %v1057_v44 }
 0x17f   :  { %986 = vmatprep.subr.bf16.mxu0 %v1198_v1 }
 0x180   :  { %979 = vmatpush3.bf16.msra.mxu1 %v1056_v31  ;;  %v1068_v31 = vld [vmem:[%s1426_s8 + $0x8] sm:$0xff]  }
 0x181   :  { %992 = vmatprep.subr.bf16.mxu1 %v1198_v1 }
 0x182   :  { %987 = vmatpush3.bf16.msra.mxu0 %v1058_v45 }
 0x183   :  { %1000 = vmatprep.subr.bf16.mxu0 %v1198_v1 }
 0x24e   :  { %v250_v33 = vpop.f32.mrb[0].mxu1  ;;  %v313_v34 = vpop.f32.mrb[4].mxu0 }
 0x24f   :  { %v314_v35 = vadd.f32 %v888_v32, %v313_v34  ;;  %v966_v36 = vpop.f32.mrb[1].mxu1  ;;  %v974_v37 = vpop.f32.mrb[5].mxu0  ;;  %v251_v53 = vadd.f32 %v884_v48, %v250_v33  ;;  %v1069_v32 = vld [vmem:[%s1428_s10] sm:$0xff]   ;;  %v912_v33 = vld [vmem:[#allocation10 + $0x4] ss:$0 sm:$0xff] }
 0x250   :  { %v253_v38 = vpop.f32.mrb[2].mxu1  ;;  %v316_v39 = vpop.f32.mrb[6].mxu0  ;;  %v904_v34 = vld [vmem:[#allocation10 + $0x5] ss:$0 sm:$0xff] }
 0x251   :  { %v319_v40 = vmax.f32 %v314_v35, 0.0  ;;  %v967_v41 = vpop.f32.mrb[3].mxu1  ;;  %v975_v42 = vpop.f32.mrb[7].mxu0 }
 0x253   :  { %v325_v43 = vpack.c.bf16 %v319_v40, %v319_v40 }
 0x255   :  { %981 = vmatmul.mubr.msk.bf16.vlgmr.msra.gmra.mrb[4].mxu1 %vm212_vm7, %v325_v43  ;;  %v916_v43 = vld [vmem:[%s1427_s9] ss:$0 sm:$0xff]  ;;  %s1160_s9 = scalar_lea.vmem %s871_s14, 32 }
 0x256   :  { %996 = vmatprep.mubr.msk.bf16.mxu1 %vm1199_vm1, %v1198_v1  ;;  %993 = vmatpush3.bf16.msra.mxu1 %v1061_v46  ;;  %p1161_p4 = scmp.ne.s32.totalorder %s871_s14, %s1160_s9  ;;  %p1166_p6 = scmp.lt.s32.totalorder %s1160_s9, %s1160_s9 }
 0x257   :  { %994 = vmatprep.subr.bf16.mxu1 %v1198_v1 }
 0x258   :  { %p1167_p7 = por %p1166_p6, %p1165_p5 }
 0x25a   :  { %995 = vmatpush3.bf16.msra.mxu1 %v1062_v60  ;;  %p1168_p8 = pnand %p1167_p7, %p1161_p4 }
 0x25b   :  { %1008 = vmatprep.subr.bf16.mxu1 %v1198_v1 }
 0x328   :  { %v381_v49 = vpop.f32.mrb[4].mxu1 }
 0x329   :  { %v382_v50 = vadd.f32 %v892_v47, %v381_v49  ;;  %v982_v51 = vpop.f32.mrb[5].mxu1 }
 0x32a   :  { %v384_v52 = vpop.f32.mrb[6].mxu1  ;;  %v920_v51 = vld [vmem:[%s1429_s11] ss:$0 sm:$0xff] }
 0x32b   :  { %v387_v54 = vmax.f32 %v382_v50, 0.0  ;;  %v983_v55 = vpop.f32.mrb[7].mxu1 }
 0x32d   :  { %v388_v56 = vadd.f32 %v387_v54, %v251_v53 }
 0x32f   :  { %v396_v58 = vpack.c.bf16 %v388_v56, %v388_v56 }
 0x331   :  { %989 = vmatmul.mubr.msk.bf16.vlgmr.msra.gmra.mrb[8].mxu0 %vm212_vm7, %v396_v58 }
 0x332   :  { %1001 = vmatpush3.bf16.msra.mxu0 %v1059_v57  ;;  %1004 = vmatprep.mubr.msk.bf16.mxu0 %vm1199_vm1, %v1198_v1 }
 0x333   :  { %1002 = vmatprep.subr.bf16.mxu0 %v1198_v1 }
 0x336   :  { %1003 = vmatpush3.bf16.msra.mxu0 %v1060_v59 }
 0x337   :  { %1016 = vmatprep.subr.bf16.mxu0 %v1198_v1 }
 0x339   :  { %1005 = vmatmul.mubr.msk.bf16.vlgmr.msra.gmra.mrb[12].mxu0 %vm212_vm7, %v396_v58 }
 0x33a   :  { %1020 = vmatprep.mubr.msk.bf16.mxu0 %vm1199_vm1, %v1198_v1  ;;  %1017 = vmatpush3.bf16.msra.mxu0 %v1065_v12 }
 0x33b   :  { %1018 = vmatprep.subr.bf16.mxu0 %v1198_v1 }
 0x33e   :  { %1019 = vmatpush3.bf16.msra.mxu0 %v1066_v21 }
 0x33f   :  { %1032 = vmatprep.subr.bf16.mxu0 %v1198_v1 }
 0x404   :  { %v452_v62 = vpop.f32.mrb[8].mxu0 }
 0x405   :  { %v453_v63 = vadd.f32 %v896_v61, %v452_v62  ;;  %v990_v0 = vpop.f32.mrb[9].mxu0 }
 0x406   :  { %v455_v2 = vpop.f32.mrb[10].mxu0 }
 0x407   :  { %v458_v3 = vmax.f32 %v453_v63, 0.0  ;;  %v991_v4 = vpop.f32.mrb[11].mxu0 }
 0x409   :  { %v466_v6 = vpack.c.bf16 %v458_v3, %v458_v3 }
 0x40b   :  { %997 = vmatmul.mubr.msk.bf16.vlgmr.msra.gmra.mrb[8].mxu1 %vm212_vm7, %v466_v6 }
 0x40c   :  { %v588_v7 = vpop.f32.mrb[12].mxu0  ;;  %1009 = vmatpush3.bf16.msra.mxu1 %v1063_v5  ;;  %1012 = vmatprep.mubr.msk.bf16.mxu1 %vm1199_vm1, %v1198_v1 }
 0x40d   :  { %v1006_v8 = vpop.f32.mrb[13].mxu0  ;;  %1010 = vmatprep.subr.bf16.mxu1 %v1198_v1  ;;  %v589_v39 = vadd.f32 %v904_v34, %v588_v7 }
 0x40e   :  { %v591_v9 = vpop.f32.mrb[14].mxu0 }
 0x40f   :  { %v1007_v10 = vpop.f32.mrb[15].mxu0 }
 0x410   :  { %1011 = vmatpush3.bf16.msra.mxu1 %v1064_v11 }
 0x411   :  { %1024 = vmatprep.subr.bf16.mxu1 %v1198_v1 }
 0x4de   :  { %v522_v14 = vpop.f32.mrb[8].mxu1 }
 0x4df   :  { %v523_v15 = vadd.f32 %v900_v13, %v522_v14  ;;  %v998_v16 = vpop.f32.mrb[9].mxu1 }
 0x4e0   :  { %v525_v17 = vpop.f32.mrb[10].mxu1 }
 0x4e1   :  { %v528_v18 = vmax.f32 %v523_v15, 0.0  ;;  %v999_v19 = vpop.f32.mrb[11].mxu1 }
 0x4e3   :  { %v601_v20 = vpack.c.bf16 %v528_v18, %v528_v18 }
 0x4e5   :  { %1013 = vmatmul.mubr.msk.bf16.vlgmr.msra.gmra.mrb[12].mxu1 %vm212_vm7, %v601_v20 }
 0x4e6   :  { %1028 = vmatprep.mubr.msk.bf16.mxu1 %vm1199_vm1, %v1198_v1  ;;  %1025 = vmatpush3.bf16.msra.mxu1 %v1067_v30 }
 0x4e7   :  { %1026 = vmatprep.subr.bf16.mxu1 %v1198_v1 }
 0x4ea   :  { %1027 = vmatpush3.bf16.msra.mxu1 %v1068_v31 }
 0x5b8   :  { %v657_v23 = vpop.f32.mrb[12].mxu1 }
 0x5b9   :  { %v658_v24 = vadd.f32 %v908_v22, %v657_v23  ;;  %v1014_v25 = vpop.f32.mrb[13].mxu1 }
 0x5ba   :  { %v660_v26 = vpop.f32.mrb[14].mxu1 }
 0x5bb   :  { %v663_v27 = vmax.f32 %v658_v24, 0.0  ;;  %v1015_v28 = vpop.f32.mrb[15].mxu1 }
 0x5bd   :  { %v671_v29 = vpack.c.bf16 %v663_v27, %v663_v27 }
 0x5bf   :  { %1021 = vmatmul.mubr.msk.bf16.vlgmr.msra.gmra.mrb[16].mxu0 %vm212_vm7, %v671_v29 }
 0x5c0   :  { %1034 = vmatprep.mubr.msk.bf16.mxu0 %vm1199_vm1, %v1198_v1  ;;  %1033 = vmatpush3.bf16.msra.mxu0 %v1069_v32 }
 0x692   :  { %v727_v35 = vpop.f32.mrb[16].mxu0 }
 0x693   :  { %v728_v36 = vadd.f32 %v912_v33, %v727_v35  ;;  %v1022_v37 = vpop.f32.mrb[17].mxu0 }
 0x694   :  { %v730_v38 = vpop.f32.mrb[18].mxu0 }
 0x695   :  { %v733_v40 = vmax.f32 %v728_v36, 0.0  ;;  %v1023_v41 = vpop.f32.mrb[19].mxu0 }
 0x697   :  { %v734_v1 = vadd.f32 %v733_v40, %v589_v39 }
 0x699   :  { %v740_v42 = vpack.c.bf16 %v734_v1, %v734_v1 }
 0x69b   :  { %1029 = vmatmul.mubr.msk.bf16.vlgmr.msra.gmra.mrb[16].mxu1 %vm212_vm7, %v740_v42 }
 0x76e   :  { %v796_v44 = vpop.f32.mrb[16].mxu1 }
 0x76f   :  { %v797_v45 = vadd.f32 %v916_v43, %v796_v44  ;;  %v1030_v46 = vpop.f32.mrb[17].mxu1 }
 0x770   :  { %v799_v47 = vpop.f32.mrb[18].mxu1 }
 0x771   :  { %v802_v48 = vmax.f32 %v797_v45, 0.0  ;;  %v1031_v49 = vpop.f32.mrb[19].mxu1 }
 0x773   :  { %v806_v50 = vpack.c.bf16 %v802_v48, %v802_v48 }
 0x775   :  { %1035 = vmatmul.mubr.msk.bf16.vlgmr.msra.gmra.mrb[20].mxu0 %vm819_vm8, %v806_v50 }
 0x848   :  { %v857_v52 = vpop.f32.mrb[20].mxu0 }
 0x849   :  { %v858_v53 = vadd.f32 %v920_v51, %v857_v52  ;;  %v1036_v54 = vpop.f32.mrb[21].mxu0 }
 0x84a   :  { %v860_v55 = vpop.f32.mrb[22].mxu0 }
 0x84b   :  { %863 = vst [vmem:[#allocation12] sm:$0x3] %v858_v53  ;;  %v1037_v56 = vpop.f32.mrb[23].mxu0 }
 0x84c   :  { %1171 = shalt.err (!%p1168_p8)
}
 0x84d   :  { %s1172_s11 = scalar_lea.hbm %s1430_s12, 32 }
 0x84e   :  { %p1173_p9 = scmp.ne.s32.totalorder %s1430_s12, %s1172_s11  ;;  %p1176_p10 = scmp.lt.u32.totalorder %s1172_s11, %s1430_s12 }
 0x850   :  { %p1178_p11 = pnand %p1176_p10, %p1173_p9 }
 0x852   :  { %1181 = shalt.err (!%p1178_p11)
}
 0x853   :  { %873 = dma.vmem_to_hbm [thread:$0]  %s871_s14, 32, %s1430_s12, [#allocation6]  }
 0x854   :  { %1188 = dma.done.wait [#allocation6], 32  }
 0x855   :  { %1189 = vsyncadd [#allocation6], 4294967264 }
 0x856   :  { %877 = vsyncpa [#allocation5], 1 }
 0x857   :  { %878 = vsyncpa [#allocation8], 1 }
 0x858   :  { %879 = vsyncpa [#allocation11], 1 }
 0x859   :  { %880 = vsyncpa [#allocation6], 1 }

</bundles_post_ra>
